<compile_context>
chip_gen: v7x
topology: tpu7x:2x2x1
jax: 0.10.0
libtpu: 0.0.40
codegen_flags: <defaults>
</compile_context>

<pallas_src>
import functools

import jax
import jax.numpy as jnp
from jax import lax
from jax.experimental import pallas as pl
from jax.experimental.pallas import tpu as pltpu

# Small, forward-consistent shapes.
BATCH = 2
SEQ = 8
D_MODEL = 32
NUM_HEADS = 4
HEAD_DIM = D_MODEL // NUM_HEADS
D_FF = 64
LN_EPS = 1e-5
LANE = 128


def encoder_layer_kernel(xm_ref, w_ref, vec_ref, out_ref, *, num_heads, d_ff):
    _, S, D = out_ref.shape
    head_dim = D // num_heads

    # ---- per-batch activation slab: rows 0:S = x, row S = mask bias ---------
    x = xm_ref[0, 0:S, :]                              # (S, D) f32
    mask_row = xm_ref[0, S:S + 1, 0:S]                 # (1, S) additive bias
    bias_sq = jnp.broadcast_to(mask_row, (S, S))       # hoisted (single bcast)

    # ---- packed bias / LayerNorm slab (static, lane-0-aligned slices) -------
    b_qkv = vec_ref[0:1, 0:3 * D]                      # (1, 3D)
    b_o = vec_ref[1:2, 0:D]
    b_1 = vec_ref[2:3, 0:d_ff]
    b_2 = vec_ref[3:4, 0:D]
    ln1_g = vec_ref[4:5, 0:D]
    ln1_b = vec_ref[5:6, 0:D]
    ln2_g = vec_ref[6:7, 0:D]
    ln2_b = vec_ref[7:8, 0:D]

    # ---- fused QKV projection (bf16 MXU, f32 accumulate; scale pre-folded) --
    xb = x.astype(jnp.bfloat16)
    qkv = jnp.dot(xb, w_ref[0:D, 0:3 * D],
                  preferred_element_type=jnp.float32) + b_qkv       # (S, 3D)

    # ---- attention: per-head, with the output projection fused into the loop
    #      (attn = sum_h ctx_h @ wo[h*Hd:(h+1)*Hd, :] == concat(ctx_h) @ wo).
    attn = jnp.zeros((S, D), jnp.float32)
    for h in range(num_heads):
        lo = h * head_dim
        hi = lo + head_dim
        q_h = qkv[:, lo:hi]                            # (S, Hd) f32
        k_h = qkv[:, D + lo:D + hi]
        v_h = qkv[:, 2 * D + lo:2 * D + hi]
        s = jnp.einsum('qd,kd->qk', q_h, k_h,
                       preferred_element_type=jnp.float32)          # (S, S)
        s = s + bias_sq
        s = s - jnp.max(s, axis=-1, keepdims=True)
        p = jnp.exp(s)
        p = p * pl.reciprocal(jnp.sum(p, axis=-1, keepdims=True), approx=True)
        ctx = jnp.dot(p, v_h, preferred_element_type=jnp.float32)   # (S, Hd)
        attn = attn + jnp.dot(ctx.astype(jnp.bfloat16),
                              w_ref[D + lo:D + hi, 0:D],
                              preferred_element_type=jnp.float32)
    attn = attn + b_o

    # ---- residual + LayerNorm 1 (f32) ---------------------------------------
    y = x + attn
    mu = jnp.mean(y, axis=-1, keepdims=True)
    var = jnp.mean((y - mu) * (y - mu), axis=-1, keepdims=True)
    y = (y - mu) * lax.rsqrt(var + LN_EPS) * ln1_g + ln1_b

    # ---- feed-forward (bf16 MXU), residual + LayerNorm 2 (f32) --------------
    h1 = jnp.dot(y.astype(jnp.bfloat16), w_ref[2 * D:3 * D, 0:d_ff],
                 preferred_element_type=jnp.float32) + b_1
    h1 = jnp.maximum(h1, 0.0)
    h2 = jnp.dot(h1.astype(jnp.bfloat16), w_ref[3 * D:3 * D + d_ff, 0:D],
                 preferred_element_type=jnp.float32) + b_2
    z = y + h2
    mu2 = jnp.mean(z, axis=-1, keepdims=True)
    var2 = jnp.mean((z - mu2) * (z - mu2), axis=-1, keepdims=True)
    z = (z - mu2) * lax.rsqrt(var2 + LN_EPS) * ln2_g + ln2_b

    out_ref[0, :, :] = z.astype(out_ref.dtype)


def pack_params(params, num_heads=NUM_HEADS):
    """Fuse QKV weights, fold attention scale, build the two parameter slabs."""
    (wq, bq, wk, bk, wv, bv, wo, bo,
     ln1_g, ln1_b, w1, b1, w2, b2, ln2_g, ln2_b) = params
    d_model = wq.shape[0]
    d_ff = w1.shape[1]
    head_dim = d_model // num_heads
    scale = 1.0 / (float(head_dim) ** 0.5)

    wqkv = jnp.concatenate([wq * scale, wk, wv], axis=1)            # (D, 3D)
    b_qkv = jnp.concatenate([bq * scale, bk, bv], axis=1)           # (1, 3D)

    assert 3 * d_model <= LANE and d_ff <= LANE
    rows = 3 * d_model + d_ff                                        # 160
    wslab = jnp.zeros((rows, LANE), jnp.float32)
    wslab = wslab.at[0:d_model, 0:3 * d_model].set(wqkv)             # wqkv
    wslab = wslab.at[d_model:2 * d_model, 0:d_model].set(wo)         # wo
    wslab = wslab.at[2 * d_model:3 * d_model, 0:d_ff].set(w1)        # w1
    wslab = wslab.at[3 * d_model:3 * d_model + d_ff, 0:d_model].set(w2)  # w2
    wslab = wslab.astype(jnp.bfloat16)                               # bf16 MXU operands

    vec = jnp.zeros((8, LANE), jnp.float32)
    vec = vec.at[0, 0:3 * d_model].set(b_qkv[0])
    vec = vec.at[1, 0:d_model].set(bo[0])
    vec = vec.at[2, 0:d_ff].set(b1[0])
    vec = vec.at[3, 0:d_model].set(b2[0])
    vec = vec.at[4, 0:d_model].set(ln1_g[0])
    vec = vec.at[5, 0:d_model].set(ln1_b[0])
    vec = vec.at[6, 0:d_model].set(ln2_g[0])
    vec = vec.at[7, 0:d_model].set(ln2_b[0])
    return wslab, vec, d_ff


def encoder_layer(seq, mask, params):
    B, S, D = seq.shape
    assert S <= D, "mask row is packed into the activation slab's lanes"

    # Additive mask bias computed once (robust vs exact-0 compare), packed as
    # row S of the per-batch activation slab (rows padded to S+8 for alignment).
    mask_bias = jnp.where(mask == 0.0, jnp.float32(-1e9), jnp.float32(0.0))  # (B,1,S)
    mask_row = jnp.pad(mask_bias, ((0, 0), (0, 0), (0, D - S)))              # (B,1,D)
    xm_rows = S + 8
    pad = jnp.zeros((B, xm_rows - S - 1, D), jnp.float32)
    xm = jnp.concatenate([seq.astype(jnp.float32), mask_row, pad], axis=1)   # (B,S+8,D)

    wslab, vec, d_ff = pack_params(params)
    kernel = functools.partial(encoder_layer_kernel,
                               num_heads=NUM_HEADS, d_ff=d_ff)

    out = pl.pallas_call(
        kernel,
        out_shape=jax.ShapeDtypeStruct((B, S, D), jnp.float32),
        grid=(B,),
        in_specs=[
            pl.BlockSpec((1, xm_rows, D), lambda b: (b, 0, 0)),   # per-batch x+mask
            pl.BlockSpec(wslab.shape, lambda b: (0, 0)),          # resident weights
            pl.BlockSpec(vec.shape, lambda b: (0, 0)),            # resident vectors
        ],
        out_specs=pl.BlockSpec((1, S, D), lambda b: (b, 0, 0)),
        compiler_params=pltpu.CompilerParams(
            dimension_semantics=("parallel",)),                   # v7x: 2nd TC
    )(xm, wslab, vec)
    return out.astype(seq.dtype)


def reference_encoder_layer(seq, mask, params):
    (wq, bq, wk, bk, wv, bv, wo, bo,
     ln1_g, ln1_b, w1, b1, w2, b2, ln2_g, ln2_b) = params

    def ln(x, g, b):
        mu = jnp.mean(x, axis=-1, keepdims=True)
        var = jnp.mean((x - mu) ** 2, axis=-1, keepdims=True)
        return (x - mu) * lax.rsqrt(var + LN_EPS) * g + b

    q = seq @ wq + bq
    k = seq @ wk + bk
    v = seq @ wv + bv
    B, S, D = seq.shape

    def split(t):
        return t.reshape(B, S, NUM_HEADS, HEAD_DIM).transpose(0, 2, 1, 3)

    qh, kh, vh = split(q), split(k), split(v)
    scores = jnp.einsum("bhqd,bhkd->bhqk", qh, kh) / jnp.sqrt(jnp.float32(HEAD_DIM))
    m = mask[:, None, :, :]                          # (B,1,1,S)
    scores = jnp.where(m == 0.0, -1e9, scores)
    p = jax.nn.softmax(scores, axis=-1)
    attn = jnp.einsum("bhqk,bhkd->bhqd", p, vh).transpose(0, 2, 1, 3).reshape(B, S, D)
    attn = attn @ wo + bo
    y = ln(seq + attn, ln1_g, ln1_b)
    h = jnp.maximum(y @ w1 + b1, 0.0)
    h = h @ w2 + b2
    return ln(y + h, ln2_g, ln2_b)


def init_params(key):
    ks = jax.random.split(key, 8)
    scale = 0.05

    def lin(k, fan_in, fan_out):
        kw, kb = jax.random.split(k)
        w = scale * jax.random.normal(kw, (fan_in, fan_out), jnp.float32)
        b = scale * jax.random.normal(kb, (1, fan_out), jnp.float32)
        return w, b

    wq, bq = lin(ks[0], D_MODEL, D_MODEL)
    wk, bk = lin(ks[1], D_MODEL, D_MODEL)
    wv, bv = lin(ks[2], D_MODEL, D_MODEL)
    wo, bo = lin(ks[3], D_MODEL, D_MODEL)
    ln1_g = jnp.ones((1, D_MODEL), jnp.float32)
    ln1_b = jnp.zeros((1, D_MODEL), jnp.float32)
    w1, b1 = lin(ks[4], D_MODEL, D_FF)
    w2, b2 = lin(ks[5], D_FF, D_MODEL)
    ln2_g = jnp.ones((1, D_MODEL), jnp.float32)
    ln2_b = jnp.zeros((1, D_MODEL), jnp.float32)
    return (wq, bq, wk, bk, wv, bv, wo, bo,
            ln1_g, ln1_b, w1, b1, w2, b2, ln2_g, ln2_b)


if __name__ == "__main__":
    key = jax.random.PRNGKey(0)
    k_seq, k_par = jax.random.split(key)

    seq = jax.random.normal(k_seq, (BATCH, SEQ, D_MODEL), jnp.float32)
    # Mostly-attendable mask with the last two keys masked (no fully-masked row;
    # a fully-masked query row would produce inf/NaN as in the reference softmax).
    mask = jnp.ones((BATCH, 1, SEQ), jnp.float32)
    mask = mask.at[:, :, SEQ - 2:].set(0.0)
    params = init_params(k_par)

    out = jax.block_until_ready(encoder_layer(seq, mask, params))
    ref = jax.block_until_ready(reference_encoder_layer(seq, mask, params))

    assert out.shape == (BATCH, SEQ, D_MODEL)
    max_err = float(jnp.max(jnp.abs(out - ref)))
    # Tolerance loosened vs the all-f32 version: matmul operands are bf16
    # (f32 accumulation) per the perf review; softmax uses approx reciprocal.
    assert jnp.allclose(out, ref, atol=2e-2, rtol=2e-2), max_err

    print("KERNEL_OK")
</pallas_src>

<mosaic_0001>
module attributes {stable_mosaic.version = 11 : i64} {
  func.func @encoder_layer_kernel(%arg0: i32, %arg1: memref<1x16x32xf32, #tpu.memory_space<vmem>>, %arg2: memref<160x128xbf16, #tpu.memory_space<vmem>>, %arg3: memref<8x128xf32, #tpu.memory_space<vmem>>, %arg4: memref<1x8x32xf32, #tpu.memory_space<vmem>>) attributes {dimension_semantics = [#tpu.dimension_semantics<parallel>], iteration_bounds = array<i64: 2>, scalar_prefetch = 0 : i64, scratch_operands = 0 : i64, tpu.core_type = #tpu.core_type<tc>, window_params = [{transform_indices = @transform_0, window_bounds = array<i64: 1, 16, 32>}, {pipeline_mode = #tpu.pipeline_mode<synchronous>, transform_indices = @transform_1, window_bounds = array<i64: 160, 128>}, {pipeline_mode = #tpu.pipeline_mode<synchronous>, transform_indices = @transform_2, window_bounds = array<i64: 8, 128>}, {transform_indices = @transform_3, window_bounds = array<i64: 1, 8, 32>}]} {
    %c0 = arith.constant 0 : index
    %c0_0 = arith.constant 0 : index
    %c0_1 = arith.constant 0 : index
    %0 = vector.load %arg1[%c0, %c0_0, %c0_1] : memref<1x16x32xf32, #tpu.memory_space<vmem>>, vector<1x8x32xf32>
    %1 = vector.shape_cast %0 : vector<1x8x32xf32> to vector<8x32xf32>
    %c0_2 = arith.constant 0 : index
    %c8 = arith.constant 8 : index
    %c0_3 = arith.constant 0 : index
    %2 = vector.load %arg1[%c0_2, %c8, %c0_3] : memref<1x16x32xf32, #tpu.memory_space<vmem>>, vector<1x1x8xf32>
    %3 = vector.shape_cast %2 : vector<1x1x8xf32> to vector<1x8xf32>
    %4 = vector.shape_cast %3 : vector<1x8xf32> to vector<1x8xf32>
    %5 = vector.broadcast %4 : vector<1x8xf32> to vector<8x8xf32>
    %c0_4 = arith.constant 0 : index
    %c0_5 = arith.constant 0 : index
    %6 = vector.load %arg3[%c0_4, %c0_5] : memref<8x128xf32, #tpu.memory_space<vmem>>, vector<1x96xf32>
    %c1 = arith.constant 1 : index
    %c0_6 = arith.constant 0 : index
    %7 = vector.load %arg3[%c1, %c0_6] : memref<8x128xf32, #tpu.memory_space<vmem>>, vector<1x32xf32>
    %c2 = arith.constant 2 : index
    %c0_7 = arith.constant 0 : index
    %8 = vector.load %arg3[%c2, %c0_7] : memref<8x128xf32, #tpu.memory_space<vmem>>, vector<1x64xf32>
    %c3 = arith.constant 3 : index
    %c0_8 = arith.constant 0 : index
    %9 = vector.load %arg3[%c3, %c0_8] : memref<8x128xf32, #tpu.memory_space<vmem>>, vector<1x32xf32>
    %c4 = arith.constant 4 : index
    %c0_9 = arith.constant 0 : index
    %10 = vector.load %arg3[%c4, %c0_9] : memref<8x128xf32, #tpu.memory_space<vmem>>, vector<1x32xf32>
    %c5 = arith.constant 5 : index
    %c0_10 = arith.constant 0 : index
    %11 = vector.load %arg3[%c5, %c0_10] : memref<8x128xf32, #tpu.memory_space<vmem>>, vector<1x32xf32>
    %c6 = arith.constant 6 : index
    %c0_11 = arith.constant 0 : index
    %12 = vector.load %arg3[%c6, %c0_11] : memref<8x128xf32, #tpu.memory_space<vmem>>, vector<1x32xf32>
    %c7 = arith.constant 7 : index
    %c0_12 = arith.constant 0 : index
    %13 = vector.load %arg3[%c7, %c0_12] : memref<8x128xf32, #tpu.memory_space<vmem>>, vector<1x32xf32>
    %14 = arith.truncf %1 : vector<8x32xf32> to vector<8x32xbf16>
    %c0_13 = arith.constant 0 : index
    %c0_14 = arith.constant 0 : index
    %15 = vector.load %arg2[%c0_13, %c0_14] : memref<160x128xbf16, #tpu.memory_space<vmem>>, vector<32x96xbf16>
    %cst = arith.constant dense<0.000000e+00> : vector<8x96xf32>
    %16 = tpu.matmul %14, %15, %cst {dimension_numbers = #tpu.dot_dimension_numbers<[1], [0], [0], [1], [0, 0, 1, 1], [], []>} : vector<8x32xbf16>, vector<32x96xbf16>, vector<8x96xf32> -> vector<8x96xf32>
    %17 = vector.broadcast %6 : vector<1x96xf32> to vector<8x96xf32>
    %18 = arith.addf %16, %17 : vector<8x96xf32>
    %cst_15 = arith.constant 0.000000e+00 : f32
    %19 = vector.broadcast %cst_15 : f32 to vector<8x32xf32>
    %20 = vector.extract_strided_slice %18 {offsets = [0, 0], sizes = [8, 8], strides = [1, 1]} : vector<8x96xf32> to vector<8x8xf32>
    %21 = vector.extract_strided_slice %18 {offsets = [0, 32], sizes = [8, 8], strides = [1, 1]} : vector<8x96xf32> to vector<8x8xf32>
    %22 = vector.extract_strided_slice %18 {offsets = [0, 64], sizes = [8, 8], strides = [1, 1]} : vector<8x96xf32> to vector<8x8xf32>
    "tpu.trace_start"() <{level = 10 : i32, message = "qd,kd->qk"}> : () -> ()
    %cst_16 = arith.constant dense<0.000000e+00> : vector<8x8xf32>
    %23 = tpu.matmul %20, %21, %cst_16 {dimension_numbers = #tpu.dot_dimension_numbers<[1], [1], [0], [0], [0, 0, 1, 0], [], []>} : vector<8x8xf32>, vector<8x8xf32>, vector<8x8xf32> -> vector<8x8xf32>
    "tpu.trace_stop"() : () -> ()
    %24 = arith.addf %23, %5 : vector<8x8xf32>
    %cst_17 = arith.constant dense<0xFF800000> : vector<8xf32>
    %25 = vector.multi_reduction <maximumf>, %24, %cst_17 [1] : vector<8x8xf32> to vector<8xf32>
    %26 = vector.shape_cast %25 : vector<8xf32> to vector<8x1xf32>
    %27 = vector.broadcast %26 : vector<8x1xf32> to vector<8x8xf32>
    %28 = arith.subf %24, %27 : vector<8x8xf32>
    %29 = math.exp %28 : vector<8x8xf32>
    %cst_18 = arith.constant dense<0.000000e+00> : vector<8xf32>
    %30 = vector.multi_reduction <add>, %29, %cst_18 [1] : vector<8x8xf32> to vector<8xf32>
    %31 = vector.shape_cast %30 : vector<8xf32> to vector<8x1xf32>
    %32 = tpu.reciprocal %31 {approx = true} : vector<8x1xf32> -> vector<8x1xf32>
    %33 = vector.broadcast %32 : vector<8x1xf32> to vector<8x8xf32>
    %34 = arith.mulf %29, %33 : vector<8x8xf32>
    %cst_19 = arith.constant dense<0.000000e+00> : vector<8x8xf32>
    %35 = tpu.matmul %34, %22, %cst_19 {dimension_numbers = #tpu.dot_dimension_numbers<[1], [0], [0], [1], [0, 0, 1, 1], [], []>} : vector<8x8xf32>, vector<8x8xf32>, vector<8x8xf32> -> vector<8x8xf32>
    %36 = arith.truncf %35 : vector<8x8xf32> to vector<8x8xbf16>
    %c32 = arith.constant 32 : index
    %c0_20 = arith.constant 0 : index
    %37 = vector.load %arg2[%c32, %c0_20] : memref<160x128xbf16, #tpu.memory_space<vmem>>, vector<8x32xbf16>
    %cst_21 = arith.constant dense<0.000000e+00> : vector<8x32xf32>
    %38 = tpu.matmul %36, %37, %cst_21 {dimension_numbers = #tpu.dot_dimension_numbers<[1], [0], [0], [1], [0, 0, 1, 1], [], []>} : vector<8x8xbf16>, vector<8x32xbf16>, vector<8x32xf32> -> vector<8x32xf32>
    %39 = arith.addf %19, %38 : vector<8x32xf32>
    %40 = vector.extract_strided_slice %18 {offsets = [0, 8], sizes = [8, 8], strides = [1, 1]} : vector<8x96xf32> to vector<8x8xf32>
    %41 = vector.extract_strided_slice %18 {offsets = [0, 40], sizes = [8, 8], strides = [1, 1]} : vector<8x96xf32> to vector<8x8xf32>
    %42 = vector.extract_strided_slice %18 {offsets = [0, 72], sizes = [8, 8], strides = [1, 1]} : vector<8x96xf32> to vector<8x8xf32>
    "tpu.trace_start"() <{level = 10 : i32, message = "qd,kd->qk"}> : () -> ()
    %cst_22 = arith.constant dense<0.000000e+00> : vector<8x8xf32>
    %43 = tpu.matmul %40, %41, %cst_22 {dimension_numbers = #tpu.dot_dimension_numbers<[1], [1], [0], [0], [0, 0, 1, 0], [], []>} : vector<8x8xf32>, vector<8x8xf32>, vector<8x8xf32> -> vector<8x8xf32>
    "tpu.trace_stop"() : () -> ()
    %44 = arith.addf %43, %5 : vector<8x8xf32>
    %cst_23 = arith.constant dense<0xFF800000> : vector<8xf32>
    %45 = vector.multi_reduction <maximumf>, %44, %cst_23 [1] : vector<8x8xf32> to vector<8xf32>
    %46 = vector.shape_cast %45 : vector<8xf32> to vector<8x1xf32>
    %47 = vector.broadcast %46 : vector<8x1xf32> to vector<8x8xf32>
    %48 = arith.subf %44, %47 : vector<8x8xf32>
    %49 = math.exp %48 : vector<8x8xf32>
    %cst_24 = arith.constant dense<0.000000e+00> : vector<8xf32>
    %50 = vector.multi_reduction <add>, %49, %cst_24 [1] : vector<8x8xf32> to vector<8xf32>
    %51 = vector.shape_cast %50 : vector<8xf32> to vector<8x1xf32>
    %52 = tpu.reciprocal %51 {approx = true} : vector<8x1xf32> -> vector<8x1xf32>
    %53 = vector.broadcast %52 : vector<8x1xf32> to vector<8x8xf32>
    %54 = arith.mulf %49, %53 : vector<8x8xf32>
    %cst_25 = arith.constant dense<0.000000e+00> : vector<8x8xf32>
    %55 = tpu.matmul %54, %42, %cst_25 {dimension_numbers = #tpu.dot_dimension_numbers<[1], [0], [0], [1], [0, 0, 1, 1], [], []>} : vector<8x8xf32>, vector<8x8xf32>, vector<8x8xf32> -> vector<8x8xf32>
    %56 = arith.truncf %55 : vector<8x8xf32> to vector<8x8xbf16>
    %c40 = arith.constant 40 : index
    %c0_26 = arith.constant 0 : index
    %57 = vector.load %arg2[%c40, %c0_26] : memref<160x128xbf16, #tpu.memory_space<vmem>>, vector<8x32xbf16>
    %cst_27 = arith.constant dense<0.000000e+00> : vector<8x32xf32>
    %58 = tpu.matmul %56, %57, %cst_27 {dimension_numbers = #tpu.dot_dimension_numbers<[1], [0], [0], [1], [0, 0, 1, 1], [], []>} : vector<8x8xbf16>, vector<8x32xbf16>, vector<8x32xf32> -> vector<8x32xf32>
    %59 = arith.addf %39, %58 : vector<8x32xf32>
    %60 = vector.extract_strided_slice %18 {offsets = [0, 16], sizes = [8, 8], strides = [1, 1]} : vector<8x96xf32> to vector<8x8xf32>
    %61 = vector.extract_strided_slice %18 {offsets = [0, 48], sizes = [8, 8], strides = [1, 1]} : vector<8x96xf32> to vector<8x8xf32>
    %62 = vector.extract_strided_slice %18 {offsets = [0, 80], sizes = [8, 8], strides = [1, 1]} : vector<8x96xf32> to vector<8x8xf32>
    "tpu.trace_start"() <{level = 10 : i32, message = "qd,kd->qk"}> : () -> ()
    %cst_28 = arith.constant dense<0.000000e+00> : vector<8x8xf32>
    %63 = tpu.matmul %60, %61, %cst_28 {dimension_numbers = #tpu.dot_dimension_numbers<[1], [1], [0], [0], [0, 0, 1, 0], [], []>} : vector<8x8xf32>, vector<8x8xf32>, vector<8x8xf32> -> vector<8x8xf32>
    "tpu.trace_stop"() : () -> ()
    %64 = arith.addf %63, %5 : vector<8x8xf32>
    %cst_29 = arith.constant dense<0xFF800000> : vector<8xf32>
    %65 = vector.multi_reduction <maximumf>, %64, %cst_29 [1] : vector<8x8xf32> to vector<8xf32>
    %66 = vector.shape_cast %65 : vector<8xf32> to vector<8x1xf32>
    %67 = vector.broadcast %66 : vector<8x1xf32> to vector<8x8xf32>
    %68 = arith.subf %64, %67 : vector<8x8xf32>
    %69 = math.exp %68 : vector<8x8xf32>
    %cst_30 = arith.constant dense<0.000000e+00> : vector<8xf32>
    %70 = vector.multi_reduction <add>, %69, %cst_30 [1] : vector<8x8xf32> to vector<8xf32>
    %71 = vector.shape_cast %70 : vector<8xf32> to vector<8x1xf32>
    %72 = tpu.reciprocal %71 {approx = true} : vector<8x1xf32> -> vector<8x1xf32>
    %73 = vector.broadcast %72 : vector<8x1xf32> to vector<8x8xf32>
    %74 = arith.mulf %69, %73 : vector<8x8xf32>
    %cst_31 = arith.constant dense<0.000000e+00> : vector<8x8xf32>
    %75 = tpu.matmul %74, %62, %cst_31 {dimension_numbers = #tpu.dot_dimension_numbers<[1], [0], [0], [1], [0, 0, 1, 1], [], []>} : vector<8x8xf32>, vector<8x8xf32>, vector<8x8xf32> -> vector<8x8xf32>
    %76 = arith.truncf %75 : vector<8x8xf32> to vector<8x8xbf16>
    %c48 = arith.constant 48 : index
    %c0_32 = arith.constant 0 : index
    %77 = vector.load %arg2[%c48, %c0_32] : memref<160x128xbf16, #tpu.memory_space<vmem>>, vector<8x32xbf16>
    %cst_33 = arith.constant dense<0.000000e+00> : vector<8x32xf32>
    %78 = tpu.matmul %76, %77, %cst_33 {dimension_numbers = #tpu.dot_dimension_numbers<[1], [0], [0], [1], [0, 0, 1, 1], [], []>} : vector<8x8xbf16>, vector<8x32xbf16>, vector<8x32xf32> -> vector<8x32xf32>
    %79 = arith.addf %59, %78 : vector<8x32xf32>
    %80 = vector.extract_strided_slice %18 {offsets = [0, 24], sizes = [8, 8], strides = [1, 1]} : vector<8x96xf32> to vector<8x8xf32>
    %81 = vector.extract_strided_slice %18 {offsets = [0, 56], sizes = [8, 8], strides = [1, 1]} : vector<8x96xf32> to vector<8x8xf32>
    %82 = vector.extract_strided_slice %18 {offsets = [0, 88], sizes = [8, 8], strides = [1, 1]} : vector<8x96xf32> to vector<8x8xf32>
    "tpu.trace_start"() <{level = 10 : i32, message = "qd,kd->qk"}> : () -> ()
    %cst_34 = arith.constant dense<0.000000e+00> : vector<8x8xf32>
    %83 = tpu.matmul %80, %81, %cst_34 {dimension_numbers = #tpu.dot_dimension_numbers<[1], [1], [0], [0], [0, 0, 1, 0], [], []>} : vector<8x8xf32>, vector<8x8xf32>, vector<8x8xf32> -> vector<8x8xf32>
    "tpu.trace_stop"() : () -> ()
    %84 = arith.addf %83, %5 : vector<8x8xf32>
    %cst_35 = arith.constant dense<0xFF800000> : vector<8xf32>
    %85 = vector.multi_reduction <maximumf>, %84, %cst_35 [1] : vector<8x8xf32> to vector<8xf32>
    %86 = vector.shape_cast %85 : vector<8xf32> to vector<8x1xf32>
    %87 = vector.broadcast %86 : vector<8x1xf32> to vector<8x8xf32>
    %88 = arith.subf %84, %87 : vector<8x8xf32>
    %89 = math.exp %88 : vector<8x8xf32>
    %cst_36 = arith.constant dense<0.000000e+00> : vector<8xf32>
    %90 = vector.multi_reduction <add>, %89, %cst_36 [1] : vector<8x8xf32> to vector<8xf32>
    %91 = vector.shape_cast %90 : vector<8xf32> to vector<8x1xf32>
    %92 = tpu.reciprocal %91 {approx = true} : vector<8x1xf32> -> vector<8x1xf32>
    %93 = vector.broadcast %92 : vector<8x1xf32> to vector<8x8xf32>
    %94 = arith.mulf %89, %93 : vector<8x8xf32>
    %cst_37 = arith.constant dense<0.000000e+00> : vector<8x8xf32>
    %95 = tpu.matmul %94, %82, %cst_37 {dimension_numbers = #tpu.dot_dimension_numbers<[1], [0], [0], [1], [0, 0, 1, 1], [], []>} : vector<8x8xf32>, vector<8x8xf32>, vector<8x8xf32> -> vector<8x8xf32>
    %96 = arith.truncf %95 : vector<8x8xf32> to vector<8x8xbf16>
    %c56 = arith.constant 56 : index
    %c0_38 = arith.constant 0 : index
    %97 = vector.load %arg2[%c56, %c0_38] : memref<160x128xbf16, #tpu.memory_space<vmem>>, vector<8x32xbf16>
    %cst_39 = arith.constant dense<0.000000e+00> : vector<8x32xf32>
    %98 = tpu.matmul %96, %97, %cst_39 {dimension_numbers = #tpu.dot_dimension_numbers<[1], [0], [0], [1], [0, 0, 1, 1], [], []>} : vector<8x8xbf16>, vector<8x32xbf16>, vector<8x32xf32> -> vector<8x32xf32>
    %99 = arith.addf %79, %98 : vector<8x32xf32>
    %100 = vector.broadcast %7 : vector<1x32xf32> to vector<8x32xf32>
    %101 = arith.addf %99, %100 : vector<8x32xf32>
    %102 = arith.addf %1, %101 : vector<8x32xf32>
    %cst_40 = arith.constant dense<0.000000e+00> : vector<8xf32>
    %103 = vector.multi_reduction <add>, %102, %cst_40 [1] : vector<8x32xf32> to vector<8xf32>
    %104 = vector.shape_cast %103 : vector<8xf32> to vector<8x1xf32>
    %cst_41 = arith.constant 3.200000e+01 : f32
    %105 = vector.broadcast %cst_41 : f32 to vector<8x1xf32>
    %106 = arith.divf %104, %105 : vector<8x1xf32>
    %107 = vector.broadcast %106 : vector<8x1xf32> to vector<8x32xf32>
    %108 = arith.subf %102, %107 : vector<8x32xf32>
    %109 = vector.broadcast %106 : vector<8x1xf32> to vector<8x32xf32>
    %110 = arith.subf %102, %109 : vector<8x32xf32>
    %111 = arith.mulf %108, %110 : vector<8x32xf32>
    %cst_42 = arith.constant dense<0.000000e+00> : vector<8xf32>
    %112 = vector.multi_reduction <add>, %111, %cst_42 [1] : vector<8x32xf32> to vector<8xf32>
    %113 = vector.shape_cast %112 : vector<8xf32> to vector<8x1xf32>
    %cst_43 = arith.constant 3.200000e+01 : f32
    %114 = vector.broadcast %cst_43 : f32 to vector<8x1xf32>
    %115 = arith.divf %113, %114 : vector<8x1xf32>
    %116 = vector.broadcast %106 : vector<8x1xf32> to vector<8x32xf32>
    %117 = arith.subf %102, %116 : vector<8x32xf32>
    %cst_44 = arith.constant 9.99999974E-6 : f32
    %118 = vector.broadcast %cst_44 : f32 to vector<8x1xf32>
    %119 = arith.addf %115, %118 : vector<8x1xf32>
    %120 = math.rsqrt %119 : vector<8x1xf32>
    %121 = vector.broadcast %120 : vector<8x1xf32> to vector<8x32xf32>
    %122 = arith.mulf %117, %121 : vector<8x32xf32>
    %123 = vector.broadcast %10 : vector<1x32xf32> to vector<8x32xf32>
    %124 = arith.mulf %122, %123 : vector<8x32xf32>
    %125 = vector.broadcast %11 : vector<1x32xf32> to vector<8x32xf32>
    %126 = arith.addf %124, %125 : vector<8x32xf32>
    %127 = arith.truncf %126 : vector<8x32xf32> to vector<8x32xbf16>
    %c64 = arith.constant 64 : index
    %c0_45 = arith.constant 0 : index
    %128 = vector.load %arg2[%c64, %c0_45] : memref<160x128xbf16, #tpu.memory_space<vmem>>, vector<32x64xbf16>
    %cst_46 = arith.constant dense<0.000000e+00> : vector<8x64xf32>
    %129 = tpu.matmul %127, %128, %cst_46 {dimension_numbers = #tpu.dot_dimension_numbers<[1], [0], [0], [1], [0, 0, 1, 1], [], []>} : vector<8x32xbf16>, vector<32x64xbf16>, vector<8x64xf32> -> vector<8x64xf32>
    %130 = vector.broadcast %8 : vector<1x64xf32> to vector<8x64xf32>
    %131 = arith.addf %129, %130 : vector<8x64xf32>
    %cst_47 = arith.constant 0.000000e+00 : f32
    %132 = vector.broadcast %cst_47 : f32 to vector<8x64xf32>
    %133 = arith.maximumf %131, %132 : vector<8x64xf32>
    %134 = arith.truncf %133 : vector<8x64xf32> to vector<8x64xbf16>
    %c96 = arith.constant 96 : index
    %c0_48 = arith.constant 0 : index
    %135 = vector.load %arg2[%c96, %c0_48] : memref<160x128xbf16, #tpu.memory_space<vmem>>, vector<64x32xbf16>
    %cst_49 = arith.constant dense<0.000000e+00> : vector<8x32xf32>
    %136 = tpu.matmul %134, %135, %cst_49 {dimension_numbers = #tpu.dot_dimension_numbers<[1], [0], [0], [1], [0, 0, 1, 1], [], []>} : vector<8x64xbf16>, vector<64x32xbf16>, vector<8x32xf32> -> vector<8x32xf32>
    %137 = vector.broadcast %9 : vector<1x32xf32> to vector<8x32xf32>
    %138 = arith.addf %136, %137 : vector<8x32xf32>
    %139 = arith.addf %126, %138 : vector<8x32xf32>
    %cst_50 = arith.constant dense<0.000000e+00> : vector<8xf32>
    %140 = vector.multi_reduction <add>, %139, %cst_50 [1] : vector<8x32xf32> to vector<8xf32>
    %141 = vector.shape_cast %140 : vector<8xf32> to vector<8x1xf32>
    %cst_51 = arith.constant 3.200000e+01 : f32
    %142 = vector.broadcast %cst_51 : f32 to vector<8x1xf32>
    %143 = arith.divf %141, %142 : vector<8x1xf32>
    %144 = vector.broadcast %143 : vector<8x1xf32> to vector<8x32xf32>
    %145 = arith.subf %139, %144 : vector<8x32xf32>
    %146 = vector.broadcast %143 : vector<8x1xf32> to vector<8x32xf32>
    %147 = arith.subf %139, %146 : vector<8x32xf32>
    %148 = arith.mulf %145, %147 : vector<8x32xf32>
    %cst_52 = arith.constant dense<0.000000e+00> : vector<8xf32>
    %149 = vector.multi_reduction <add>, %148, %cst_52 [1] : vector<8x32xf32> to vector<8xf32>
    %150 = vector.shape_cast %149 : vector<8xf32> to vector<8x1xf32>
    %cst_53 = arith.constant 3.200000e+01 : f32
    %151 = vector.broadcast %cst_53 : f32 to vector<8x1xf32>
    %152 = arith.divf %150, %151 : vector<8x1xf32>
    %153 = vector.broadcast %143 : vector<8x1xf32> to vector<8x32xf32>
    %154 = arith.subf %139, %153 : vector<8x32xf32>
    %cst_54 = arith.constant 9.99999974E-6 : f32
    %155 = vector.broadcast %cst_54 : f32 to vector<8x1xf32>
    %156 = arith.addf %152, %155 : vector<8x1xf32>
    %157 = math.rsqrt %156 : vector<8x1xf32>
    %158 = vector.broadcast %157 : vector<8x1xf32> to vector<8x32xf32>
    %159 = arith.mulf %154, %158 : vector<8x32xf32>
    %160 = vector.broadcast %12 : vector<1x32xf32> to vector<8x32xf32>
    %161 = arith.mulf %159, %160 : vector<8x32xf32>
    %162 = vector.broadcast %13 : vector<1x32xf32> to vector<8x32xf32>
    %163 = arith.addf %161, %162 : vector<8x32xf32>
    %c0_55 = arith.constant 0 : index
    %c0_56 = arith.constant 0 : index
    %c0_57 = arith.constant 0 : index
    %164 = vector.load %arg4[%c0_55, %c0_56, %c0_57] : memref<1x8x32xf32, #tpu.memory_space<vmem>>, vector<1x8x32xf32>
    %165 = vector.shape_cast %164 : vector<1x8x32xf32> to vector<8x32xf32>
    %166 = vector.shape_cast %163 : vector<8x32xf32> to vector<1x8x32xf32>
    tpu.vector_store %arg4[%c0_55, %c0_56, %c0_57], %166 {strides = array<i32>} : memref<1x8x32xf32, #tpu.memory_space<vmem>>, vector<1x8x32xf32>,
    return
  }
  func.func @transform_0(%arg0: i32) -> (i32, i32, i32) {
    %c0_i32 = arith.constant 0 : i32
    %c0_i32_0 = arith.constant 0 : i32
    %c0_i32_1 = arith.constant 0 : i32
    return %arg0, %c0_i32, %c0_i32_0 : i32, i32, i32
  }
  func.func @transform_1(%arg0: i32) -> (i32, i32) {
    %c0_i32 = arith.constant 0 : i32
    %c0_i32_0 = arith.constant 0 : i32
    %c0_i32_1 = arith.constant 0 : i32
    return %c0_i32, %c0_i32_0 : i32, i32
  }
  func.func @transform_2(%arg0: i32) -> (i32, i32) {
    %c0_i32 = arith.constant 0 : i32
    %c0_i32_0 = arith.constant 0 : i32
    %c0_i32_1 = arith.constant 0 : i32
    return %c0_i32, %c0_i32_0 : i32, i32
  }
  func.func @transform_3(%arg0: i32) -> (i32, i32, i32) {
    %c0_i32 = arith.constant 0 : i32
    %c0_i32_0 = arith.constant 0 : i32
    %c0_i32_1 = arith.constant 0 : i32
    return %arg0, %c0_i32, %c0_i32_0 : i32, i32, i32
  }
}

</mosaic_0001>

<bundles_post_ra>
// kernel: tpu_custom_call.1
= control target key start
LH: loop header
LB: loop body
LE: loop exit
PB: predicated region body
PF: predicated region fallthrough
CT: control target
= control target key end

     0   :  { %8 = vsyncpa [#allocation3], 0  ;;  %s2294_s0 = inlined_call_operand.hbm [shape: f32[2,16,32], index: 0, kind: input, shape index: {}]   ;;  %s2295_s1 = inlined_call_operand.hbm [shape: bf16[160,128], index: 1, kind: input, shape index: {}]   ;;  %s2296_s2 = inlined_call_operand.hbm [shape: f32[8,128], index: 2, kind: input, shape index: {}]   ;;  %s2297_s3 = inlined_call_operand.hbm [shape: f32[2,8,32], index: 3, kind: output, shape index: {}]  }
   0x1   :  { %10 = vsyncpa [#allocation3 + $0x1], 0 }
   0x2   :  { %11 = vsyncpa [#allocation6], 0 }
   0x3   :  { %12 = vsyncpa [#allocation4], 0 }
   0x4   :  { %14 = vsyncpa [#allocation4 + $0x1], 0  ;;  %s1947_s12 = smov 0   ;;  %s1949_s13 = smov 0  }
   0x5   :  { %s1951_s14 = smov 0   ;;  %s1953_s15 = smov 0  }
   0x6 LB: > { %s1968_s16 = sadd.s32 4294967295, %s1904_s15   ;;  %s1455_s17 = sadd.s32 4294967294, %s1904_s15   ;;  %s1904_s15 = sphi %s1953_s15, %s2317_s15   ;;  %s1900_s14 = sphi %s1951_s14, %s2316_s14   ;;  %s1896_s13 = sphi %s1949_s13, %s2315_s13   ;;  %s1892_s12 = sphi %s1947_s12, %s2314_s12  }
   0x7   : > { %p40_p0 = scmp.ne.s32.totalorder %s1896_s13, %s1892_s12  ;;  %p2298_p1 = scmp.eq.s32.totalorder %s1968_s16, 0 }
   0x8   : > { %p112_p3 = scmp.eq.s32.totalorder %s1455_s17, 1  ;;  %p1456_p5 = scmp.ge.s32.totalorder %s1904_s15, 1 }
   0x9   : > { %p1977_p4 = por %p2298_p1, %p40_p0  ;;  %p119_p7 = scmp.lt.s32.totalorder %s1904_s15, 3 }
   0xa   : > { %p1982_p6 = por %p112_p3, %p40_p0  ;;  %s1906_s21 = smov [#allocation5]  }
   0xb   : > { %s2301_s18 = scalar_select %p1977_p4, 1, 0 }
   0xc   : > { %s2302_s19 = scalar_select %p1982_p6, 1, 0 }
   0xd   : > { %p1987_p8 = pnand %p1456_p5, %p119_p7  ;;  %s131_s22 = sshll.u32 %s1906_s21, 4  ;;  %s1991_s22 = int_to_ptr.vmem [resolvable:$true] %s131_s22 }
   0xe   : > { %s1907_s24 = smov [#allocation7]   ;;  %s1748_s28 = scalar_lea.hbm %s2295_s1, 1280 }
   0xf   : > { %p1648_p9 = pneg %p1987_p8  ;;  %s145_s25 = sshll.u32 %s1907_s24, 4  ;;  %s2002_s25 = int_to_ptr.vmem [resolvable:$true] %s145_s25 }
  0x10   : > { %p1749_p12 = scmp.ne.s32.totalorder %s2295_s1, %s1748_s28  ;;  %p1755_p5 = scmp.lt.u32.totalorder %s1748_s28, %s2295_s1 }
  0x11   : > { %p1998_p11 = pnand %p1648_p9, %p2298_p1 }
  0x13   : > { %p1750_p13 = pneg %p1998_p11 }
  0x15   : > { %p1751_p0 = pnand %p1750_p13, %p1749_p12 }
  0x17   : > { %p1752_p3 = pneg %p1751_p0 }
  0x19   : > { %p1757_p7 = pnand %p1755_p5, %p1752_p3 }
  0x1b   : > { %1760 = shalt.err (!%p1757_p7)
}
  0x1c   : > { %s1761_s6 = scalar_lea.vmem %s1991_s22, 1280  ;;  %p1769_p2 = scmp.lt.s32.totalorder %s1991_s22, %s1991_s22 }
  0x1d   : > { %p1762_p9 = scmp.ne.s32.totalorder %s1991_s22, %s1761_s6  ;;  %p1770_p12 = scmp.lt.s32.totalorder %s1761_s6, %s1761_s6 }
  0x1f   : > { %p1764_p10 = pnand %p1762_p9, %p1750_p13  ;;  %p1771_p0 = por %p1770_p12, %p1769_p2 }
  0x21   : > { %p1765_p1 = pneg %p1764_p10 }
  0x23   : > { %p1772_p6 = pnand %p1771_p0, %p1765_p1 }
  0x25   : > { %1775 = shalt.err (!%p1772_p6)
}
  0x26   : > { %s1908_s7 = smov 64   ;;  %s1909_s8 = smov 4  }
  0x27   : > { %1651 = dma.hbm_to_vmem [thread:$0]  (!%p1998_p11), %s2295_s1, 1280, %s1991_s22, [#allocation6], %s1908_s7, %s1908_s7, %s1909_s8  }
  0x28   : > { %s1776_s21 = scalar_lea.hbm %s2296_s2, 128 }
  0x29   : > { %p1777_p2 = scmp.ne.s32.totalorder %s2296_s2, %s1776_s21  ;;  %p1783_p10 = scmp.lt.u32.totalorder %s1776_s21, %s2296_s2 }
  0x2b   : > { %p1779_p1 = pnand %p1777_p2, %p1750_p13 }
  0x2d   : > { %p1780_p6 = pneg %p1779_p1 }
  0x2f   : > { %p1785_p3 = pnand %p1783_p10, %p1780_p6 }
  0x31   : > { %1788 = shalt.err (!%p1785_p3)
}
  0x32   : > { %s1789_s22 = scalar_lea.vmem %s2002_s25, 128  ;;  %p1797_p12 = scmp.lt.s32.totalorder %s2002_s25, %s2002_s25 }
  0x33   : > { %p1790_p5 = scmp.ne.s32.totalorder %s2002_s25, %s1789_s22  ;;  %p1798_p0 = scmp.lt.s32.totalorder %s1789_s22, %s1789_s22 }
  0x35   : > { %p1792_p7 = pnand %p1790_p5, %p1750_p13  ;;  %p1799_p2 = por %p1798_p0, %p1797_p12 }
  0x37   : > { %p1793_p9 = pneg %p1792_p7 }
  0x39   : > { %p1800_p1 = pnand %p1799_p2, %p1793_p9 }
  0x3b   : > { %1803 = shalt.err (!%p1800_p1)
}
  0x3c   : > { %1654 = dma.hbm_to_vmem [thread:$0]  (!%p1998_p11), %s2296_s2, 128, %s2002_s25, [#allocation6]  }
  0x3d   : > { %s2057_s4 = sadd.s32 1, %s1904_s15   ;;  %s27_s23 = sadd.s32 1, %s1900_s14 }
  0x3e   : > { %s24_s5 = ssub.s32 %s1904_s15, %s2057_s4  ;;  %p34_p13 = scmp.ne.s32.totalorder %s1900_s14, %s1896_s13 }
  0x3f   : > { %p25_p6 = scmp.eq.s32.totalorder %s24_s5, 0  ;;  %p35_p10 = scmp.eq.s32.totalorder %s1904_s15, 0 }
  0x40   : > { %p2305_p3 = scmp.eq.s32.totalorder %s1968_s16, 1  ;;  %p1665_p7 = scmp.lt.s32.totalorder %s1904_s15, 2 }
  0x41   : > { %s2073_s7 = scalar_select %p25_p6, %s1900_s14, %s27_s23  }
  0x42   : > { %p2067_p5 = por %p2305_p3, %p34_p13  ;;  %p36_p9 = por %p35_p10, %p34_p13 }
  0x43   : > { %s156_s8 = sand.u32 1, %s1900_s14   ;;  %s1508_s25 = sshll.u32 %s1904_s15, 8 }
  0x44   : > { %s2306_s6 = scalar_select %p2067_p5, 1, 0 }
  0x45   : > { %s1460_s9 = sshll.u32 %s156_s8, 4  ;;  %s2080_s17 = scalar_lea.hbm %s2294_s0, %s1508_s25 }
  0x46   : > { %s160_s21 = scalar_lea.vmem [#allocation2], %s1460_s9  ;;  %p2084_p11 = pnand %p1665_p7, %p36_p9 }
  0x47   : > { %s167_s24 = sshll.u32 %s160_s21, 4  ;;  %s2088_s27 = scalar_lea.sflag [#allocation3], %s156_s8  ;;  %s2082_s24 = int_to_ptr.vmem [resolvable:$true] %s167_s24 }
  0x48   : > { %s1804_s28 = scalar_lea.hbm %s2080_s17, 256  ;;  %p1806_p0 = pneg %p2084_p11 }
  0x49   : > { %p1805_p12 = scmp.ne.s32.totalorder %s2080_s17, %s1804_s28  ;;  %s1809_s30 = scalar_lea.hbm %s2294_s0, 512 }
  0x4a   : > { %p1810_p13 = scmp.lt.u32.totalorder %s2080_s17, %s2294_s0  ;;  %p1811_p6 = scmp.lt.u32.totalorder %s1809_s30, %s1804_s28 }
  0x4b   : > { %p1807_p2 = pnand %p1806_p0, %p1805_p12  ;;  %p1813_p3 = scmp.lt.u32.totalorder %s1804_s28, %s2080_s17 }
  0x4c   : > { %p1812_p10 = por %p1811_p6, %p1810_p13 }
  0x4d   : > { %p1808_p1 = pneg %p1807_p2 }
  0x4e   : > { %p1814_p7 = por %p1813_p3, %p1812_p10 }
  0x50   : > { %p1815_p9 = pnand %p1814_p7, %p1808_p1 }
  0x52   : > { %1818 = shalt.err (!%p1815_p9)
}
  0x53   : > { %s1819_s8 = scalar_lea.vmem %s2082_s24, 256  ;;  %s1910_s9 = smov [#allocation2]  }
  0x54   : > { %p1820_p12 = scmp.ne.s32.totalorder %s2082_s24, %s1819_s8  ;;  %s1824_s25 = sshll.u32 %s1910_s9, 4  ;;  %s1825_s25 = int_to_ptr.vmem [resolvable:$false] %s1824_s25 }
  0x55   : > { %s1826_s10 = scalar_lea.vmem %s1825_s25, 512  ;;  %p1827_p4 = scmp.lt.s32.totalorder %s2082_s24, %s1825_s25 }
  0x56   : > { %p1822_p2 = pnand %p1820_p12, %p1806_p0  ;;  %p1828_p13 = scmp.lt.s32.totalorder %s1826_s10, %s1819_s8 }
  0x58   : > { %p1823_p5 = pneg %p1822_p2  ;;  %p1829_p6 = por %p1828_p13, %p1827_p4 }
  0x5a   : > { %p1830_p10 = pnand %p1829_p6, %p1823_p5 }
  0x5c   : > { %1833 = shalt.err (!%p1830_p10)
}
  0x5d   : > { %s1911_s11 = smov 128   ;;  %s1912_s21 = smov 8  }
  0x5e   : > { %1658 = dma.hbm_to_vmem [thread:$0]  (!%p2084_p11), %s2080_s17, 256, %s2082_s24, %s2088_s27, %s1911_s11, %s1911_s11, %s1912_s21  }
  0x5f   : > { %179 = sbr.rel (%p1987_p8) target bundleno = 4298 (0x10ca), region = 32  ;;  %s2119_s28 = sand.u32 (!%p1987_p8), 1, %s1896_s13  }
  0x60   : > { %s1464_s22 = sshll.u32 (!%p1987_p8), %s2119_s28, 4  ;;  %s182_s29 = scalar_lea.sflag (!%p1987_p8), [#allocation3], %s2119_s28 }
  0x61   : > { %s2123_s30 = scalar_lea.vmem (!%p1987_p8), [#allocation2], %s1464_s22  ;;  %p2308_p4 = scmp.ne.s32.totalorder (!%p1987_p8), %s2301_s18, 0 }
  0x66   : > { %1879 = dma.done.wait (%p2308_p4), %s182_s29, 256  }
  0x67   : > { %1881 = vsyncadd (%p2308_p4), %s182_s29, 4294967040  ;;  %p2309_p5 = scmp.eq.s32.totalorder %s1968_s16, 0 }
  0x69   : > { %1883 = dma.done.wait (%p2309_p5), [#allocation6], 1408   ;;  %p2310_p8 = pmov %p2309_p5 }
  0x6a   : > { %v1913_v0 = vmov 0.0   ;;  %vm1914_vm0 = vmmov 0   ;;  %v1720_v1 = vld [vmem:[#allocation5] sm:$0xff]   ;;  %v1721_v2 = vld [vmem:[#allocation5 + $0x8] sm:$0xff]   ;;  %vm252_vm1 = vcmask 261120   ;;  %s1915_s18 = smov 64  }
  0x6b   : > { %1885 = vsyncadd (%p2310_p8), [#allocation6], 4294965888  ;;  %1544 = vmatprep.subr.bf16.mxu0 %v1913_v0  ;;  %1548 = vmatprep.mubr.msk.bf16.mxu0 %vm1914_vm0, %v1913_v0  ;;  %v2140_v3 = vld [vmem:[%s2123_s30] sm:$0xff]  ;;  %s1916_s20 = smov 96   ;;  %s1917_s17 = smov 88   ;;  %vm299_vm2 = vcmask 64512  }
  0x6c   : > { %1557 = vmatprep.subr.mxu1 %v1913_v0  ;;  %1559 = vmatprep.mubr.msk.f32.mxu1 %vm1914_vm0, %v1913_v0  ;;  %v231_v4 = vpack.c.bf16 %v2140_v3, %v2140_v3  ;;  %v1469_v5 = vld [vmem:[#allocation7] ss:$0 sm:$0xff]  ;;  %v2162_v13 = vld [vmem:[%s2123_s30 + $0x8] ss:$0 sm:$0xff]  ;;  %s1918_s24 = smov 120   ;;  %s1919_s26 = smov 56  }
  0x6d   : > { %1545 = vmatpush3.bf16.msra.mxu0 %v1720_v1  ;;  %s1920_s27 = smov 80   ;;  %s1921_s23 = smov 112   ;;  %vm633_vm3 = vcmask 1043456   ;;  %v629_v39 = vld [vmem:[#allocation5 + $0x14] sm:$0xf]  ;;  %vm1283_vm4 = vcmask 523264  }
  0x6e   : > { %1546 = vmatprep.subr.bf16.mxu0 %v1913_v0  ;;  %v635_v40 = vsel %vm633_vm3, %v629_v39, 0  ;;  %v462_v43 = vld [vmem:[#allocation5 + $0x10] sm:$0xf]  ;;  %s1922_s5 = smov 48   ;;  %s1923_s8 = smov 72  }
  0x6f   : > { %v681_v46 = vsel %vm633_vm3, %v462_v43, 0  ;;  %s1924_s9 = smov 104   ;;  %s1925_s25 = smov 40   ;;  %v1103_v39 = vld [vmem:[#allocation5 + $0x1c] sm:$0xf] }
  0x70   : > { %v1489_v43 = vld [vmem:[#allocation7 + $0x1] ss:$0 sm:$0xff]  ;;  %s1467_s10 = sshll.u32 %s2119_s28, 3  ;;  %s1505_s11 = sshll.u32 %s1968_s16, 7 }
  0x71   : > { %1547 = vmatpush3.bf16.msra.mxu0 %v1721_v2  ;;  %s215_s21 = scalar_lea.vmem [#allocation8], %s1467_s10  ;;  %p2311_p0 = scmp.ne.s32.totalorder %s2306_s6, 0 }
  0x72   : > { %1552 = vmatprep.subr.mxu0 %v1913_v0  ;;  %s1366_s22 = sshll.u32 %s215_s21, 4  ;;  %s1926_s16 = smov [#allocation8]   ;;  %s2251_s22 = int_to_ptr.vmem [resolvable:$true] %s1366_s22 }
  0x74   : > { %1549 = vmatmul.mubr.msk.bf16.vlgmr.msra.gmra.mrb[0].mxu0 %vm252_vm1, %v231_v4 }
  0x75   : > { %1554 = vmatprep.mubr.msk.f32.mxu0 %vm1914_vm0, %v1913_v0 }
 0x147   : > { %v290_v6 = vpop.f32.mrb[0].mxu0 }
 0x148   : > { %v2149_v7 = vadd.f32 %v1469_v5, %v290_v6  ;;  %v1550_v8 = vpop.f32.mrb[1].mxu0 }
 0x149   : > { %v293_v9 = vpop.f32.mrb[2].mxu0 }
 0x14a   : > { %385 = vrot.lane.b32.xlu1 %v2149_v7, %s1915_s18  ;;  %297 = vrot.lane.b32.xlu0 %v2149_v7, %s1916_s20  ;;  %v1551_v10 = vpop.f32.mrb[3].mxu0  ;;  %s2249_s18 = scalar_lea.hbm %s2297_s3, %s1505_s11  ;;  %s1353_s20 = scalar_lea.sflag [#allocation4], %s2119_s28 }
 0x14e   : > { %465 = vrot.lane.b32.xlu1 %v2149_v7, %s1917_s17  ;;  %s1834_s17 = scalar_lea.vmem %s2251_s22, 128 }
 0x14f   : > { %p1835_p11 = scmp.ne.s32.totalorder %s2251_s22, %s1834_s17 }
 0x151   : > { %p1836_p1 = pnand %p1835_p11, %p2311_p0 }
 0x153   : > { %p1837_p3 = pneg %p1836_p1 }
 0x1bc   : > { %v386_v11 = vpop.permute.xlu1 %385  ;;  %v298_v12 = vpop.permute.xlu0 %297 }
 0x1bd   : > { %1553 = vmatpush3.xpose.msk.msra.mxu0 %vm299_vm2, %v298_v12  ;;  %1558 = vmatpush3.msra.mxu1 %v386_v11 }
 0x1be   : > { %1562 = vmatprep.subr.mxu1 %v1913_v0  ;;  %1567 = vmatprep.subr.mxu0 %v1913_v0 }
 0x1c0   : > { %1555 = vmatmul.mubr.msk.f32.vlgmr.msra.gmra.mrb[4].mxu0 %vm299_vm2, %v2149_v7  ;;  %v466_v23 = vpop.permute.xlu1 %465 }
 0x1c1   : > { %1569 = vmatprep.mubr.msk.f32.mxu0 %vm1914_vm0, %v1913_v0 }
 0x293   : > { %v370_v14 = vpop.f32.mrb[4].mxu0 }
 0x294   : > { %v371_v15 = vadd.f32 %v2162_v13, %v370_v14  ;;  %v1556_v16 = vpop.f32.mrb[5].mxu0 }
 0x296   : > { %v374_v17 = vsel %vm299_vm2, %v371_v15, -inf }
 0x297   : > { %375 = vmax.xlane.f32.xlu0 %v374_v17  ;;  %v889_v17 = vld [vmem:[#allocation5 + $0x18] sm:$0xf] }
 0x324   : > { %v376_v18 = vpop.xlane.xlu0 %375 }
 0x325   : > { %v377_v19 = vsub.f32 %v371_v15, %v376_v18  ;;  %v894_v18 = vsel %vm633_vm3, %v889_v17, 0 }
 0x327   : > { %v378_v20 = vmul.f32 1.442695, %v377_v19 }
 0x329   : > { %1728 = vpow2.f32 %v378_v20 }
 0x333   : > { %v1729_v21 = vpop.eup %1728 }
 0x334   : > { %v380_v22 = vsel %vm299_vm2, %v1729_v21, 0.0 }
 0x335   : > { %381 = vadd.xlane.f32.xlu1 %v380_v22 }
 0x346   : > { %463 = vrot.lane.b32.xlu1 %v2149_v7, %s1918_s24  ;;  %s1838_s24 = sshll.u32 %s1926_s16, 4  ;;  %s1839_s24 = int_to_ptr.vmem [resolvable:$false] %s1838_s24 }
 0x347   : > { %p1841_p7 = scmp.lt.s32.totalorder %s2251_s22, %s1839_s24 }
 0x3c2   : > { %v382_v24 = vpop.xlane.xlu1 %381 }
 0x3c3   : > { %1730 = vrcp.f32 %v382_v24 }
 0x3c6   : > { %v464_v27 = vpop.permute.xlu1 %463 }
 0x3cd   : > { %v1731_v25 = vpop.eup %1730 }
 0x3ce   : > { %v384_v26 = vmul.f32 %v1731_v25, %v1729_v21 }
 0x3d0   : > { %1560 = vmatmul.mubr.msk.f32.vlgmr.msra.gmra.mrb[0].mxu1 %vm299_vm2, %v384_v26 }
 0x3d1   : > { %1563 = vmatpush3.xpose.msk.msra.mxu1 %vm299_vm2, %v466_v23  ;;  %1564 = vmatprep.mubr.msk.f32.mxu1 %vm1914_vm0, %v1913_v0 }
 0x3d2   : > { %1572 = vmatprep.subr.bf16.mxu1 %v1913_v0 }
 0x3d4   : > { %1565 = vmatmul.mubr.msk.f32.vlgmr.msra.gmra.mrb[2].mxu1 %vm299_vm2, %v464_v27 }
 0x3d5   : > { %1574 = vmatprep.mubr.msk.bf16.mxu1 %vm1914_vm0, %v1913_v0  ;;  %1573 = vmatpush3.bf16.msra.mxu1 %v635_v40 }
 0x3d6   : > { %1584 = vmatprep.subr.mxu1 %v1913_v0 }
 0x4a3   : > { %v457_v28 = vpop.f32.mrb[0].mxu1 }
 0x4a4   : > { %v1561_v29 = vpop.f32.mrb[1].mxu1  ;;  %v461_v47 = vpack.c.bf16 %v457_v28, %v457_v28 }
 0x4a7   : > { %v537_v30 = vpop.f32.mrb[2].mxu1 }
 0x4a8   : > { %v538_v31 = vadd.f32 %v2162_v13, %v537_v30  ;;  %v1566_v32 = vpop.f32.mrb[3].mxu1 }
 0x4aa   : > { %v541_v33 = vsel %vm299_vm2, %v538_v31, -inf }
 0x4ab   : > { %542 = vmax.xlane.f32.xlu1 %v541_v33 }
 0x538   : > { %v543_v34 = vpop.xlane.xlu1 %542 }
 0x539   : > { %v544_v35 = vsub.f32 %v538_v31, %v543_v34 }
 0x53b   : > { %v545_v36 = vmul.f32 1.442695, %v544_v35 }
 0x53d   : > { %1732 = vpow2.f32 %v545_v36 }
 0x547   : > { %v1733_v37 = vpop.eup %1732 }
 0x548   : > { %v547_v38 = vsel %vm299_vm2, %v1733_v37, 0.0 }
 0x549   : > { %548 = vadd.xlane.f32.xlu0 %v547_v38 }
 0x55f   : > { %552 = vrot.lane.b32.xlu0 %v2149_v7, %s1919_s26  ;;  %s1840_s26 = scalar_lea.vmem %s1839_s24, 256 }
 0x560   : > { %p1842_p9 = scmp.lt.s32.totalorder %s1840_s26, %s1834_s17 }
 0x562   : > { %p1843_p12 = por %p1842_p9, %p1841_p7 }
 0x563   : > { %725 = vrot.lane.b32.xlu0 %v2149_v7, %s1920_s27 }
 0x564   : > { %p1844_p2 = pnand %p1843_p12, %p1837_p3 }
 0x567   : > { %723 = vrot.lane.b32.xlu0 %v2149_v7, %s1921_s23 }
 0x5d6   : > { %v549_v41 = vpop.xlane.xlu0 %548 }
 0x5d7   : > { %1734 = vrcp.f32 %v549_v41 }
 0x5da   : > { %v553_v42 = vpop.permute.xlu0 %552 }
 0x5db   : > { %1568 = vmatpush3.msra.mxu0 %v553_v42 }
 0x5dc   : > { %1578 = vmatprep.subr.bf16.mxu0 %v1913_v0 }
 0x5de   : > { %v726_v51 = vpop.permute.xlu0 %725 }
 0x5e1   : > { %v1735_v44 = vpop.eup %1734 }
 0x5e2   : > { %v551_v45 = vmul.f32 %v1735_v44, %v1733_v37  ;;  %v724_v56 = vpop.permute.xlu0 %723 }
 0x5e4   : > { %1570 = vmatmul.mubr.msk.f32.vlgmr.msra.gmra.mrb[6].mxu0 %vm299_vm2, %v551_v45 }
 0x5e5   : > { %1579 = vmatpush3.bf16.msra.mxu0 %v681_v46  ;;  %1580 = vmatprep.mubr.msk.bf16.mxu0 %vm1914_vm0, %v1913_v0 }
 0x5e6   : > { %1589 = vmatprep.subr.mxu0 %v1913_v0 }
 0x5e8   : > { %1581 = vmatmul.mubr.msk.bf16.vlgmr.msra.gmra.mrb[8].mxu0 %vm299_vm2, %v461_v47 }
 0x5e9   : > { %1591 = vmatprep.mubr.msk.f32.mxu0 %vm1914_vm0, %v1913_v0 }
 0x6b7   : > { %v624_v48 = vpop.f32.mrb[6].mxu0 }
 0x6b8   : > { %v628_v49 = vpack.c.bf16 %v624_v48, %v624_v48  ;;  %v1571_v50 = vpop.f32.mrb[7].mxu0 }
 0x6ba   : > { %1575 = vmatmul.mubr.msk.bf16.vlgmr.msra.gmra.mrb[4].mxu1 %vm299_vm2, %v628_v49 }
 0x6bb   : > { %1585 = vmatpush3.xpose.msk.msra.mxu1 %vm299_vm2, %v726_v51  ;;  %v717_v52 = vpop.f32.mrb[8].mxu0  ;;  %1586 = vmatprep.mubr.msk.f32.mxu1 %vm1914_vm0, %v1913_v0 }
 0x6bc   : > { %v1582_v53 = vpop.f32.mrb[9].mxu0  ;;  %1594 = vmatprep.subr.bf16.mxu1 %v1913_v0 }
 0x6bd   : > { %v720_v54 = vpop.f32.mrb[10].mxu0 }
 0x6be   : > { %v1583_v55 = vpop.f32.mrb[11].mxu0 }
 0x6c2   : > { %1587 = vmatmul.mubr.msk.f32.vlgmr.msra.gmra.mrb[8].mxu1 %vm299_vm2, %v724_v56 }
 0x6c3   : > { %1596 = vmatprep.mubr.msk.bf16.mxu1 %vm1914_vm0, %v1913_v0  ;;  %1595 = vmatpush3.bf16.msra.mxu1 %v894_v18 }
 0x6c4   : > { %1610 = vmatprep.subr.bf16.mxu1 %v1913_v0 }
 0x78d   : > { %v671_v57 = vpop.f32.mrb[4].mxu1 }
 0x78e   : > { %v718_v58 = vadd.f32 %v717_v52, %v671_v57  ;;  %v1576_v59 = vpop.f32.mrb[5].mxu1  ;;  %v1722_v57 = vld [vmem:[#allocation5 + $0x20] sm:$0xff]  }
 0x78f   : > { %v674_v60 = vpop.f32.mrb[6].mxu1  ;;  %v1724_v59 = vld [vmem:[#allocation5 + $0x30] sm:$0xff]  }
 0x790   : > { %v1577_v61 = vpop.f32.mrb[7].mxu1  ;;  %v1725_v60 = vld [vmem:[#allocation5 + $0x38] sm:$0xff]  }
 0x795   : > { %v797_v62 = vpop.f32.mrb[8].mxu1 }
 0x796   : > { %v798_v63 = vadd.f32 %v2162_v13, %v797_v62  ;;  %v1588_v1 = vpop.f32.mrb[9].mxu1 }
 0x797   : > { %v1490_v1 = vld [vmem:[#allocation7 + $0x4] ss:$0 sm:$0xff] }
 0x798   : > { %v801_v2 = vsel %vm299_vm2, %v798_v63, -inf }
 0x799   : > { %802 = vmax.xlane.f32.xlu1 %v801_v2 }
 0x7aa   : > { %812 = vrot.lane.b32.xlu1 %v2149_v7, %s1922_s5 }
 0x7ae   : > { %939 = vrot.lane.b32.xlu1 %v2149_v7, %s1923_s8 }
 0x7b2   : > { %937 = vrot.lane.b32.xlu1 %v2149_v7, %s1924_s9 }
 0x826   : > { %v803_v4 = vpop.xlane.xlu1 %802 }
 0x827   : > { %v804_v5 = vsub.f32 %v798_v63, %v803_v4  ;;  %v1491_v4 = vld [vmem:[#allocation7 + $0x5] ss:$0 sm:$0xff] }
 0x829   : > { %v805_v6 = vmul.f32 1.442695, %v804_v5 }
 0x82a   : > { %v813_v8 = vpop.permute.xlu1 %812 }
 0x82b   : > { %1736 = vpow2.f32 %v805_v6  ;;  %1590 = vmatpush3.msra.mxu0 %v813_v8 }
 0x82c   : > { %1600 = vmatprep.subr.mxu0 %v1913_v0 }
 0x82e   : > { %v940_v14 = vpop.permute.xlu1 %939 }
 0x832   : > { %v938_v16 = vpop.permute.xlu1 %937 }
 0x835   : > { %v1737_v9 = vpop.eup %1736 }
 0x836   : > { %v807_v10 = vsel %vm299_vm2, %v1737_v9, 0.0 }
 0x837   : > { %808 = vadd.xlane.f32.xlu0 %v807_v10  ;;  %v1727_v10 = vld [vmem:[#allocation5 + $0x48] sm:$0xff]  }
 0x8c4   : > { %v809_v11 = vpop.xlane.xlu0 %808 }
 0x8c5   : > { %1738 = vrcp.f32 %v809_v11  ;;  %v1492_v11 = vld [vmem:[#allocation7 + $0x2] ss:$0 sm:$0xff] }
 0x8cf   : > { %v1739_v12 = vpop.eup %1738 }
 0x8d0   : > { %v811_v15 = vmul.f32 %v1739_v12, %v1737_v9  ;;  %v1726_v9 = vld [vmem:[#allocation5 + $0x40] sm:$0xff]  }
 0x8d2   : > { %1592 = vmatmul.mubr.msk.f32.vlgmr.msra.gmra.mrb[12].mxu0 %vm299_vm2, %v811_v15 }
 0x8d3   : > { %1601 = vmatpush3.xpose.msk.msra.mxu0 %vm299_vm2, %v940_v14  ;;  %1602 = vmatprep.mubr.msk.f32.mxu0 %vm1914_vm0, %v1913_v0 }
 0x8d4   : > { %1605 = vmatprep.subr.mxu0 %v1913_v0 }
 0x8d6   : > { %1603 = vmatmul.mubr.msk.f32.vlgmr.msra.gmra.mrb[14].mxu0 %vm299_vm2, %v938_v16 }
 0x8d7   : > { %1607 = vmatprep.mubr.msk.f32.mxu0 %vm1914_vm0, %v1913_v0 }
 0x9a5   : > { %v884_v19 = vpop.f32.mrb[12].mxu0 }
 0x9a6   : > { %v888_v20 = vpack.c.bf16 %v884_v19, %v884_v19  ;;  %v1593_v21 = vpop.f32.mrb[13].mxu0 }
 0x9a8   : > { %1597 = vmatmul.mubr.msk.bf16.vlgmr.msra.gmra.mrb[12].mxu1 %vm299_vm2, %v888_v20  ;;  %v1496_v20 = vld [vmem:[#allocation7 + $0x3] ss:$0 sm:$0xff] }
 0x9a9   : > { %v1011_v22 = vpop.f32.mrb[14].mxu0  ;;  %1612 = vmatprep.mubr.msk.bf16.mxu1 %vm1914_vm0, %v1913_v0 }
 0x9aa   : > { %v1012_v23 = vadd.f32 %v2162_v13, %v1011_v22  ;;  %v1604_v24 = vpop.f32.mrb[15].mxu0 }
 0x9ac   : > { %v1015_v25 = vsel %vm299_vm2, %v1012_v23, -inf }
 0x9ad   : > { %1016 = vmax.xlane.f32.xlu1 %v1015_v25 }
 0xa3a   : > { %v1017_v26 = vpop.xlane.xlu1 %1016 }
 0xa3b   : > { %v1018_v27 = vsub.f32 %v1012_v23, %v1017_v26 }
 0xa3d   : > { %v1019_v28 = vmul.f32 1.442695, %v1018_v27 }
 0xa3f   : > { %1740 = vpow2.f32 %v1019_v28 }
 0xa49   : > { %v1741_v29 = vpop.eup %1740 }
 0xa4a   : > { %v1021_v30 = vsel %vm299_vm2, %v1741_v29, 0.0 }
 0xa4b   : > { %1022 = vadd.xlane.f32.xlu0 %v1021_v30 }
 0xa61   : > { %1026 = vrot.lane.b32.xlu0 %v2149_v7, %s1925_s25  ;;  %v1108_v7 = vsel %vm633_vm3, %v1103_v39, 0 }
 0xa62   : > { %1611 = vmatpush3.bf16.msra.mxu1 %v1108_v7 }
 0xa63   : > { %1624 = vmatprep.subr.bf16.mxu1 %v1913_v0 }
 0xa7b   : > { %v930_v31 = vpop.f32.mrb[12].mxu1 }
 0xa7c   : > { %v936_v32 = vadd.f32 %v930_v31, %v718_v58  ;;  %v1598_v33 = vpop.f32.mrb[13].mxu1  ;;  %v1723_v58 = vld [vmem:[#allocation5 + $0x28] sm:$0xff]  }
 0xa7d   : > { %v933_v34 = vpop.f32.mrb[14].mxu1 }
 0xa7e   : > { %v1599_v13 = vpop.f32.mrb[15].mxu1 }
 0xad8   : > { %v1023_v35 = vpop.xlane.xlu0 %1022 }
 0xad9   : > { %1742 = vrcp.f32 %v1023_v35  ;;  %v1502_v35 = vld [vmem:[#allocation7 + $0x6] ss:$0 sm:$0xff] }
 0xadc   : > { %v1027_v36 = vpop.permute.xlu0 %1026 }
 0xadd   : > { %1606 = vmatpush3.msra.mxu0 %v1027_v36 }
 0xade   : > { %1616 = vmatprep.subr.bf16.mxu0 %v1913_v0 }
 0xae3   : > { %v1743_v37 = vpop.eup %1742 }
 0xae4   : > { %v1025_v38 = vmul.f32 %v1743_v37, %v1741_v29  ;;  %v1503_v37 = vld [vmem:[#allocation7 + $0x7] ss:$0 sm:$0xff] }
 0xae6   : > { %1608 = vmatmul.mubr.msk.f32.vlgmr.msra.gmra.mrb[16].mxu0 %vm299_vm2, %v1025_v38 }
 0xae7   : > { %1620 = vmatprep.mubr.msk.bf16.mxu0 %vm1914_vm0, %v1913_v0  ;;  %1617 = vmatpush3.bf16.msra.mxu0 %v1722_v57 }
 0xae8   : > { %1618 = vmatprep.subr.bf16.mxu0 %v1913_v0 }
 0xaeb   : > { %1619 = vmatpush3.bf16.msra.mxu0 %v1723_v58 }
 0xbb9   : > { %v1098_v40 = vpop.f32.mrb[16].mxu0 }
 0xbba   : > { %v1102_v41 = vpack.c.bf16 %v1098_v40, %v1098_v40  ;;  %v1609_v42 = vpop.f32.mrb[17].mxu0 }
 0xbbc   : > { %1613 = vmatmul.mubr.msk.bf16.vlgmr.msra.gmra.mrb[16].mxu1 %vm299_vm2, %v1102_v41 }
 0xbbd   : > { %1632 = vmatprep.mubr.msk.bf16.mxu1 %vm1914_vm0, %v1913_v0  ;;  %1625 = vmatpush3.bf16.msra.mxu1 %v1724_v59 }
 0xbbe   : > { %1626 = vmatprep.subr.bf16.mxu1 %v1913_v0 }
 0xbc1   : > { %1627 = vmatpush3.bf16.msra.mxu1 %v1725_v60 }
 0xbc2   : > { %1628 = vmatprep.subr.bf16.mxu1 %v1913_v0 }
 0xbc5   : > { %1629 = vmatpush3.bf16.msra.mxu1 %v1726_v9 }
 0xbc6   : > { %1630 = vmatprep.subr.bf16.mxu1 %v1913_v0 }
 0xbc9   : > { %1631 = vmatpush3.bf16.msra.mxu1 %v1727_v10 }
 0xc8f   : > { %v1144_v44 = vpop.f32.mrb[16].mxu1 }
 0xc90   : > { %v1150_v45 = vadd.f32 %v1144_v44, %v936_v32  ;;  %v1614_v46 = vpop.f32.mrb[17].mxu1 }
 0xc91   : > { %v1147_v47 = vpop.f32.mrb[18].mxu1 }
 0xc92   : > { %v1155_v48 = vadd.f32 %v1489_v43, %v1150_v45  ;;  %v1615_v49 = vpop.f32.mrb[19].mxu1 }
 0xc94   : > { %v1156_v50 = vadd.f32 %v1155_v48, %v2140_v3 }
 0xc96   : > { %v1157_v51 = vsel %vm252_vm1, %v1156_v50, 0.0 }
 0xc97   : > { %1158 = vadd.xlane.f32.xlu0 %v1157_v51 }
 0xd24   : > { %v1159_v52 = vpop.xlane.xlu0 %1158 }
 0xd25   : > { %v1161_v53 = vmul.f32 0.03125, %v1159_v52 }
 0xd27   : > { %v1162_v54 = vsub.f32 %v1156_v50, %v1161_v53 }
 0xd29   : > { %v1163_v55 = vmul.f32 %v1162_v54, %v1162_v54 }
 0xd2b   : > { %v1164_v56 = vsel %vm252_vm1, %v1163_v55, 0.0 }
 0xd2c   : > { %1165 = vadd.xlane.f32.xlu1 %v1164_v56 }
 0xdb9   : > { %v1166_v3 = vpop.xlane.xlu1 %1165 }
 0xdba   : > { %v1167_v61 = vmul.f32 0.03125, %v1166_v3 }
 0xdbc   : > { %v1168_v62 = vadd.f32 1e-05, %v1167_v61 }
 0xdbe   : > { %1744 = vrsqrt.f32 %v1168_v62 }
 0xdc8   : > { %v1745_v63 = vpop.eup %1744 }
 0xdc9   : > { %v1170_v2 = vmul.f32 %v1745_v63, %v1162_v54 }
 0xdcb   : > { %v1175_v5 = vmul.f32 %v1490_v1, %v1170_v2 }
 0xdcd   : > { %v1180_v6 = vadd.f32 %v1491_v4, %v1175_v5 }
 0xdcf   : > { %v1181_v8 = vpack.c.bf16 %v1180_v6, %v1180_v6 }
 0xdd1   : > { %1621 = vmatmul.mubr.msk.bf16.vlgmr.msra.gmra.mrb[20].mxu0 %vm252_vm1, %v1181_v8 }
 0xea4   : > { %v1239_v12 = vpop.f32.mrb[20].mxu0 }
 0xea5   : > { %v1240_v14 = vadd.f32 %v1492_v11, %v1239_v12  ;;  %v1622_v15 = vpop.f32.mrb[21].mxu0 }
 0xea6   : > { %v1242_v16 = vpop.f32.mrb[22].mxu0 }
 0xea7   : > { %v1245_v17 = vmax.f32 %v1240_v14, 0.0  ;;  %v1623_v18 = vpop.f32.mrb[23].mxu0 }
 0xea9   : > { %v1246_v19 = vpack.c.bf16 %v1245_v17, %v1245_v17 }
 0xeab   : > { %1633 = vmatmul.mubr.msk.bf16.vlgmr.msra.gmra.mrb[20].mxu1 %vm1283_vm4, %v1246_v19 }
 0xf7e   : > { %v1321_v21 = vpop.f32.mrb[20].mxu1 }
 0xf7f   : > { %v1322_v22 = vadd.f32 %v1496_v20, %v1321_v21  ;;  %v1634_v23 = vpop.f32.mrb[21].mxu1 }
 0xf80   : > { %v1324_v24 = vpop.f32.mrb[22].mxu1 }
 0xf81   : > { %v1635_v25 = vpop.f32.mrb[23].mxu1  ;;  %v1327_v0 = vadd.f32 %v1322_v22, %v1180_v6 }
 0xf83   : > { %v1328_v26 = vsel %vm252_vm1, %v1327_v0, 0.0 }
 0xf84   : > { %1329 = vadd.xlane.f32.xlu1 %v1328_v26 }
0x1011   : > { %v1330_v27 = vpop.xlane.xlu1 %1329 }
0x1012   : > { %v1331_v28 = vmul.f32 0.03125, %v1330_v27 }
0x1014   : > { %v1332_v29 = vsub.f32 %v1327_v0, %v1331_v28 }
0x1016   : > { %v1333_v30 = vmul.f32 %v1332_v29, %v1332_v29 }
0x1018   : > { %v1334_v31 = vsel %vm252_vm1, %v1333_v30, 0.0 }
0x1019   : > { %1335 = vadd.xlane.f32.xlu1 %v1334_v31 }
0x10a6   : > { %v1336_v32 = vpop.xlane.xlu1 %1335 }
0x10a7   : > { %v1337_v33 = vmul.f32 0.03125, %v1336_v32 }
0x10a9   : > { %v1338_v34 = vadd.f32 1e-05, %v1337_v33 }
0x10ab   : > { %1746 = vrsqrt.f32 %v1338_v34 }
0x10b5   : > { %v1747_v13 = vpop.eup %1746 }
0x10b6   : > { %v1340_v36 = vmul.f32 %v1747_v13, %v1332_v29 }
0x10b8   : > { %v1345_v38 = vmul.f32 %v1502_v35, %v1340_v36 }
0x10ba   : > { %v1350_v39 = vadd.f32 %v1503_v37, %v1345_v38 }
0x10bc   : > { %1351 = vst.msk [vmem:[%s215_s21] sm:$0xff] %vm252_vm1, %v1350_v39 }
0x10bd   : > { %1847 = shalt.err (!%p1844_p2)
}
0x10be   : > { %s1848_s28 = scalar_lea.hbm %s2249_s18, 128  ;;  %s1852_s5 = scalar_lea.hbm %s2297_s3, 256 }
0x10bf   : > { %p1849_p13 = scmp.ne.s32.totalorder %s2249_s18, %s1848_s28  ;;  %p1853_p4 = scmp.lt.u32.totalorder %s2249_s18, %s2297_s3 }
0x10c0   : > { %p1854_p5 = scmp.lt.u32.totalorder %s1852_s5, %s1848_s28  ;;  %p1856_p11 = scmp.lt.u32.totalorder %s1848_s28, %s2249_s18 }
0x10c1   : > { %p1850_p6 = pnand %p1849_p13, %p2311_p0 }
0x10c2   : > { %p1855_p8 = por %p1854_p5, %p1853_p4 }
0x10c3   : > { %p1851_p10 = pneg %p1850_p6 }
0x10c4   : > { %p1857_p1 = por %p1856_p11, %p1855_p8 }
0x10c6   : > { %p1858_p3 = pnand %p1857_p1, %p1851_p10 }
0x10c8   : > { %1861 = shalt.err (!%p1858_p3)
}
0x10c9   : > { %1646 = dma.vmem_to_hbm [thread:$0]  (%p2311_p0), %s2251_s22, 128, %s2249_s18, %s1353_s20  }
0x10ca PF: > { %s1378_s25 = sand.u32 1, %s1892_s12   ;;  %p2312_p7 = scmp.ne.s32.totalorder %s2302_s19, 0 }
0x10cb   : > { %p2313_p9 = scmp.ge.s32.totalorder %s1904_s15, 2  ;;  %s1379_s10 = scalar_lea.sflag [#allocation4], %s1378_s25 }
0x10cd   : > { %p1660_p12 = pnand %p2313_p9, %p2312_p7 }
0x10cf   : > { %1887 = dma.done.wait (!%p1660_p12), %s1379_s10, 128  }
0x10d0   : > { %1889 = vsyncadd (!%p1660_p12), %s1379_s10, 4294967168  ;;  %p17_p2 = scmp.ge.s32.totalorder %s2057_s4, 4   ;;  %s2314_s12 = smov %s1896_s13 }
0x10d1   : > { %s2315_s13 = smov %s1900_s14  ;;  %s2316_s14 = smov %s2073_s7 }
0x10d2   : > { %s2317_s15 = smov %s2057_s4  ;;  %19 = sbr.rel (!%p17_p2) target bundleno = 6 (0x6), region = 85 }
0x10d9   :  { %1384 = vsyncpa [#allocation3], 1 }
0x10da   :  { %1386 = vsyncpa [#allocation3 + $0x1], 1 }
0x10db   :  { %1387 = vsyncpa [#allocation6], 1 }
0x10dc   :  { %1388 = vsyncpa [#allocation4], 1 }
0x10dd   :  { %1390 = vsyncpa [#allocation4 + $0x1], 1 }

</bundles_post_ra>
